<compile_context>
chip_gen: v6e
topology: v6e:2x2x1
jax: 0.10.0
libtpu: 0.0.40
codegen_flags: <defaults>
</compile_context>

<pallas_src>
import jax
import jax.numpy as jnp
from jax.experimental import pallas as pl
from jax.experimental.pallas import tpu as pltpu


# ----------------------------- helpers ---------------------------------------


def _round_up(n, m):
    return ((n + m - 1) // m) * m


def _device_kind():
    try:
        return jax.devices()[0].device_kind.lower()
    except Exception:
        return ""


def _lrelu(v):
    return jnp.maximum(v, 0.2 * v)  # LeakyReLU(0.2); 0.2 < 1 so max() is exact


def _block_diag(a, b):
    ra, ca = a.shape
    rb, cb = b.shape
    top = jnp.concatenate([a, jnp.zeros((ra, cb), a.dtype)], axis=1)
    bot = jnp.concatenate([jnp.zeros((rb, ca), b.dtype), b], axis=1)
    return jnp.concatenate([top, bot], axis=0)


# ----------------------------- kernels ---------------------------------------


def _img2text_kernel_blockdiag(x_ref, w1_ref, b1_ref, w2_ref, b2_ref,
                               w3_ref, b3_ref, o_ref):
    """v6e/v7x path: layers 2/3 are block-diagonal 256-wide matmuls."""
    cd = w1_ref.dtype
    x = x_ref[...].astype(cd)                                   # in-kernel cast

    h = _lrelu(jnp.dot(x, w1_ref[...],
                       preferred_element_type=jnp.float32) + b1_ref[...])
    h = _lrelu(jnp.dot(h.astype(cd), w2_ref[...],
                       preferred_element_type=jnp.float32) + b2_ref[...])
    y = jnp.dot(h.astype(cd), w3_ref[...],
                preferred_element_type=jnp.float32) + b3_ref[...]

    o_ref[...] = y.astype(o_ref.dtype)                          # (block, 2*O)


def _img2text_kernel_perhead(x_ref, w1c_ref, b1c_ref,
                             w2f_ref, b2f_ref, w2l_ref, b2l_ref,
                             w3f_ref, b3f_ref, w3l_ref, b3l_ref,
                             o_ref):
    """v5e path: shared layer 1, per-head 128-wide layers 2/3."""
    cd = w1c_ref.dtype
    M = w2f_ref.shape[0]
    x = x_ref[...].astype(cd)                                   # in-kernel cast

    h = _lrelu(jnp.dot(x, w1c_ref[...],
                       preferred_element_type=jnp.float32) + b1c_ref[...])
    hf = h[:, :M].astype(cd)                                    # lane-aligned
    hl = h[:, M:].astype(cd)

    hf = _lrelu(jnp.dot(hf, w2f_ref[...],
                        preferred_element_type=jnp.float32) + b2f_ref[...])
    hl = _lrelu(jnp.dot(hl, w2l_ref[...],
                        preferred_element_type=jnp.float32) + b2l_ref[...])

    yf = jnp.dot(hf.astype(cd), w3f_ref[...],
                 preferred_element_type=jnp.float32) + b3f_ref[...]
    yl = jnp.dot(hl.astype(cd), w3l_ref[...],
                 preferred_element_type=jnp.float32) + b3l_ref[...]

    o_ref[...] = jnp.concatenate([yf, yl], axis=1).astype(o_ref.dtype)


# ----------------------------- wrapper ----------------------------------------


def fuse_img2text_params(p_first, p_last, compute_dtype=jnp.bfloat16, mode=None):
    """Pre-fuse / pre-cast both heads' parameters (do once at init).

    mode: "blockdiag" (v6e/v7x, 256-wide MXU) | "perhead" (v5e, 128-wide MXU)
          | None (auto-detect from the local device kind).
    """
    if mode is None:
        mode = "perhead" if "v5" in _device_kind() else "blockdiag"
    cd = compute_dtype
    f32 = jnp.float32

    fused = {
        "mode": mode,
        # layer 1 of both heads concatenated along the output axis -> N = 2M
        "w1c": jnp.concatenate([p_first["w1"], p_last["w1"]], axis=1).astype(cd),
        "b1c": jnp.concatenate([p_first["b1"], p_last["b1"]], axis=1).astype(f32),
    }
    if mode == "blockdiag":
        fused.update({
            "w2c": _block_diag(p_first["w2"], p_last["w2"]).astype(cd),
            "b2c": jnp.concatenate([p_first["b2"], p_last["b2"]], axis=1).astype(f32),
            "w3c": _block_diag(p_first["w3"], p_last["w3"]).astype(cd),
            "b3c": jnp.concatenate([p_first["b3"], p_last["b3"]], axis=1).astype(f32),
        })
    else:
        fused.update({
            "w2f": p_first["w2"].astype(cd), "b2f": p_first["b2"].astype(f32),
            "w2l": p_last["w2"].astype(cd),  "b2l": p_last["b2"].astype(f32),
            "w3f": p_first["w3"].astype(cd), "b3f": p_first["b3"].astype(f32),
            "w3l": p_last["w3"].astype(cd),  "b3l": p_last["b3"].astype(f32),
        })
    return fused


def _choose_block(B, block_b, two_cores):
    block = max(8, min(block_b, _round_up(B, 8)))
    # v7x (2 TensorCores): make sure the "parallel" batch axis has >= 2 grid
    # steps for moderate-to-large B so both cores get work.
    if two_cores and B >= 256:
        block = min(block, _round_up(pl.cdiv(B, 2), 8))
    # Memory-bound kernel: avoid a mostly-padded trailing tile.
    while block > 256 and (pl.cdiv(B, block) * block - B) > block // 2:
        block = _round_up(block // 2, 8)
    return block


def img2text_pallas(x, fused, *, block_b=1024):
    """Fused IMG2TEXT forward: returns (first, last), each (B, output_dim)."""
    B, D = x.shape
    out_dtype = x.dtype
    mode = fused["mode"]
    M2 = fused["w1c"].shape[1]

    def full(r, c):
        # Grid-invariant tiny block: whole array stays resident in VMEM.
        return pl.BlockSpec((r, c), lambda i: (0, 0))

    if mode == "blockdiag":
        O = fused["w3c"].shape[1] // 2
        kernel = _img2text_kernel_blockdiag
        operands = (fused["w1c"], fused["b1c"], fused["w2c"], fused["b2c"],
                    fused["w3c"], fused["b3c"])
        weight_specs = [full(D, M2), full(1, M2),
                        full(M2, M2), full(1, M2),
                        full(M2, 2 * O), full(1, 2 * O)]
    else:
        M = M2 // 2
        O = fused["w3f"].shape[1]
        kernel = _img2text_kernel_perhead
        operands = (fused["w1c"], fused["b1c"],
                    fused["w2f"], fused["b2f"], fused["w2l"], fused["b2l"],
                    fused["w3f"], fused["b3f"], fused["w3l"], fused["b3l"])
        weight_specs = [full(D, M2), full(1, M2),
                        full(M, M), full(1, M), full(M, M), full(1, M),
                        full(M, O), full(1, O), full(M, O), full(1, O)]

    two_cores = "v7" in _device_kind()
    block = _choose_block(B, block_b, two_cores)
    grid = (pl.cdiv(B, block),)   # partial trailing block handled by Pallas

    out = pl.pallas_call(
        kernel,
        out_shape=jax.ShapeDtypeStruct((B, 2 * O), out_dtype),
        grid_spec=pltpu.PrefetchScalarGridSpec(
            num_scalar_prefetch=0,
            grid=grid,
            in_specs=[pl.BlockSpec((block, D), lambda i: (i, 0))] + weight_specs,
            out_specs=pl.BlockSpec((block, 2 * O), lambda i: (i, 0)),
        ),
        compiler_params=pltpu.CompilerParams(
            dimension_semantics=("parallel",)),   # shards across TCs on v7x
    )(x, *operands)

    # Split the lane-concatenated heads in the wrapper.
    return out[:, :O], out[:, O:]


# ---------------- parameter init (deterministic, torch-Linear style) ---------


def _init_linear(key, in_dim, out_dim, dtype=jnp.float32):
    """Returns (W transposed to (in, out), bias (1, out)), Kaiming-uniform-ish."""
    kw, kb = jax.random.split(key)
    bound = 1.0 / jnp.sqrt(in_dim)
    w = jax.random.uniform(kw, (out_dim, in_dim), dtype, -bound, bound)  # torch layout
    b = jax.random.uniform(kb, (out_dim,), dtype, -bound, bound)
    return w.T, b.reshape(1, out_dim)


def init_mlp_params(key, embed_dim, middle_dim, output_dim):
    k1, k2, k3 = jax.random.split(key, 3)
    w1, b1 = _init_linear(k1, embed_dim, middle_dim)
    w2, b2 = _init_linear(k2, middle_dim, middle_dim)
    w3, b3 = _init_linear(k3, middle_dim, output_dim)
    return {"w1": w1, "b1": b1, "w2": w2, "b2": b2, "w3": w3, "b3": b3}


# ---------------- pure-JAX reference (eval-mode torch semantics) -------------


def mlp_ref(x, p, compute_dtype=jnp.float32):
    def dot(a, w):
        return jnp.dot(a.astype(compute_dtype), w.astype(compute_dtype),
                       preferred_element_type=jnp.float32)

    h = _lrelu(dot(x, p["w1"]) + p["b1"])
    h = _lrelu(dot(h, p["w2"]) + p["b2"])
    return dot(h, p["w3"]) + p["b3"]


if __name__ == "__main__":
    # Small, TPU-friendly shapes consistent with the module (128-multiples).
    B, EMBED, MIDDLE, OUT = 16, 128, 128, 128

    key = jax.random.PRNGKey(0)
    kx, kf, kl = jax.random.split(key, 3)

    x = jax.random.normal(kx, (B, EMBED), jnp.float32)
    p_first = init_mlp_params(kf, EMBED, MIDDLE, OUT)
    p_last = init_mlp_params(kl, EMBED, MIDDLE, OUT)

    # References mirroring kernel numerics (bf16 operands, f32 accumulation)
    # and a full-precision reference (loose tolerance).
    ref_first_bf = mlp_ref(x, p_first, compute_dtype=jnp.bfloat16)
    ref_last_bf = mlp_ref(x, p_last, compute_dtype=jnp.bfloat16)
    ref_first_f32 = mlp_ref(x, p_first, compute_dtype=jnp.float32)
    ref_last_f32 = mlp_ref(x, p_last, compute_dtype=jnp.float32)

    # Exercise both chip-specific variants (auto-detection picks one of them
    # in normal use via mode=None).
    for mode in ("blockdiag", "perhead"):
        fused = fuse_img2text_params(p_first, p_last,
                                     compute_dtype=jnp.bfloat16, mode=mode)
        first, last = img2text_pallas(x, fused, block_b=1024)
        first, last = jax.block_until_ready((first, last))

        assert first.shape == (B, OUT) and last.shape == (B, OUT)
        assert jnp.allclose(first, ref_first_bf, atol=1e-2, rtol=1e-2), mode
        assert jnp.allclose(last, ref_last_bf, atol=1e-2, rtol=1e-2), mode
        assert jnp.allclose(first, ref_first_f32, atol=5e-2, rtol=5e-2), mode
        assert jnp.allclose(last, ref_last_f32, atol=5e-2, rtol=5e-2), mode

    print("KERNEL_OK")
</pallas_src>

<mosaic_0001>
module attributes {stable_mosaic.version = 11 : i64} {
  func.func @_img2text_kernel_blockdiag(%arg0: i32, %arg1: memref<16x128xf32, #tpu.memory_space<vmem>>, %arg2: memref<128x256xbf16, #tpu.memory_space<vmem>>, %arg3: memref<1x256xf32, #tpu.memory_space<vmem>>, %arg4: memref<256x256xbf16, #tpu.memory_space<vmem>>, %arg5: memref<1x256xf32, #tpu.memory_space<vmem>>, %arg6: memref<256x256xbf16, #tpu.memory_space<vmem>>, %arg7: memref<1x256xf32, #tpu.memory_space<vmem>>, %arg8: memref<16x256xf32, #tpu.memory_space<vmem>>) attributes {dimension_semantics = [#tpu.dimension_semantics<parallel>], iteration_bounds = array<i64: 1>, scalar_prefetch = 0 : i64, scratch_operands = 0 : i64, tpu.core_type = #tpu.core_type<tc>, window_params = [{transform_indices = @transform_0, window_bounds = array<i64: 16, 128>}, {pipeline_mode = #tpu.pipeline_mode<synchronous>, transform_indices = @transform_1, window_bounds = array<i64: 128, 256>}, {pipeline_mode = #tpu.pipeline_mode<synchronous>, transform_indices = @transform_2, window_bounds = array<i64: 1, 256>}, {pipeline_mode = #tpu.pipeline_mode<synchronous>, transform_indices = @transform_3, window_bounds = array<i64: 256, 256>}, {pipeline_mode = #tpu.pipeline_mode<synchronous>, transform_indices = @transform_4, window_bounds = array<i64: 1, 256>}, {pipeline_mode = #tpu.pipeline_mode<synchronous>, transform_indices = @transform_5, window_bounds = array<i64: 256, 256>}, {pipeline_mode = #tpu.pipeline_mode<synchronous>, transform_indices = @transform_6, window_bounds = array<i64: 1, 256>}, {transform_indices = @transform_7, window_bounds = array<i64: 16, 256>}]} {
    %c0 = arith.constant 0 : index
    %c0_0 = arith.constant 0 : index
    %0 = vector.load %arg1[%c0, %c0_0] : memref<16x128xf32, #tpu.memory_space<vmem>>, vector<16x128xf32>
    %1 = arith.truncf %0 : vector<16x128xf32> to vector<16x128xbf16>
    %c0_1 = arith.constant 0 : index
    %c0_2 = arith.constant 0 : index
    %2 = vector.load %arg2[%c0_1, %c0_2] : memref<128x256xbf16, #tpu.memory_space<vmem>>, vector<128x256xbf16>
    %cst = arith.constant dense<0.000000e+00> : vector<16x256xf32>
    %3 = tpu.matmul %1, %2, %cst {dimension_numbers = #tpu.dot_dimension_numbers<[1], [0], [0], [1], [0, 0, 1, 1], [], []>} : vector<16x128xbf16>, vector<128x256xbf16>, vector<16x256xf32> -> vector<16x256xf32>
    %c0_3 = arith.constant 0 : index
    %c0_4 = arith.constant 0 : index
    %4 = vector.load %arg3[%c0_3, %c0_4] : memref<1x256xf32, #tpu.memory_space<vmem>>, vector<1x256xf32>
    %5 = vector.broadcast %4 : vector<1x256xf32> to vector<16x256xf32>
    %6 = arith.addf %3, %5 : vector<16x256xf32>
    %cst_5 = arith.constant 2.000000e-01 : f32
    %7 = vector.broadcast %cst_5 : f32 to vector<16x256xf32>
    %8 = arith.mulf %7, %6 : vector<16x256xf32>
    %9 = arith.maximumf %6, %8 : vector<16x256xf32>
    %10 = arith.truncf %9 : vector<16x256xf32> to vector<16x256xbf16>
    %c0_6 = arith.constant 0 : index
    %c0_7 = arith.constant 0 : index
    %11 = vector.load %arg4[%c0_6, %c0_7] : memref<256x256xbf16, #tpu.memory_space<vmem>>, vector<256x256xbf16>
    %cst_8 = arith.constant dense<0.000000e+00> : vector<16x256xf32>
    %12 = tpu.matmul %10, %11, %cst_8 {dimension_numbers = #tpu.dot_dimension_numbers<[1], [0], [0], [1], [0, 0, 1, 1], [], []>} : vector<16x256xbf16>, vector<256x256xbf16>, vector<16x256xf32> -> vector<16x256xf32>
    %c0_9 = arith.constant 0 : index
    %c0_10 = arith.constant 0 : index
    %13 = vector.load %arg5[%c0_9, %c0_10] : memref<1x256xf32, #tpu.memory_space<vmem>>, vector<1x256xf32>
    %14 = vector.broadcast %13 : vector<1x256xf32> to vector<16x256xf32>
    %15 = arith.addf %12, %14 : vector<16x256xf32>
    %cst_11 = arith.constant 2.000000e-01 : f32
    %16 = vector.broadcast %cst_11 : f32 to vector<16x256xf32>
    %17 = arith.mulf %16, %15 : vector<16x256xf32>
    %18 = arith.maximumf %15, %17 : vector<16x256xf32>
    %19 = arith.truncf %18 : vector<16x256xf32> to vector<16x256xbf16>
    %c0_12 = arith.constant 0 : index
    %c0_13 = arith.constant 0 : index
    %20 = vector.load %arg6[%c0_12, %c0_13] : memref<256x256xbf16, #tpu.memory_space<vmem>>, vector<256x256xbf16>
    %cst_14 = arith.constant dense<0.000000e+00> : vector<16x256xf32>
    %21 = tpu.matmul %19, %20, %cst_14 {dimension_numbers = #tpu.dot_dimension_numbers<[1], [0], [0], [1], [0, 0, 1, 1], [], []>} : vector<16x256xbf16>, vector<256x256xbf16>, vector<16x256xf32> -> vector<16x256xf32>
    %c0_15 = arith.constant 0 : index
    %c0_16 = arith.constant 0 : index
    %22 = vector.load %arg7[%c0_15, %c0_16] : memref<1x256xf32, #tpu.memory_space<vmem>>, vector<1x256xf32>
    %23 = vector.broadcast %22 : vector<1x256xf32> to vector<16x256xf32>
    %24 = arith.addf %21, %23 : vector<16x256xf32>
    %c0_17 = arith.constant 0 : index
    %c0_18 = arith.constant 0 : index
    %25 = vector.load %arg8[%c0_17, %c0_18] : memref<16x256xf32, #tpu.memory_space<vmem>>, vector<16x256xf32>
    tpu.vector_store %arg8[%c0_17, %c0_18], %24 {strides = array<i32>} : memref<16x256xf32, #tpu.memory_space<vmem>>, vector<16x256xf32>,
    return
  }
  func.func @transform_0(%arg0: i32) -> (i32, i32) {
    %c0_i32 = arith.constant 0 : i32
    %c0_i32_0 = arith.constant 0 : i32
    return %arg0, %c0_i32 : i32, i32
  }
  func.func @transform_1(%arg0: i32) -> (i32, i32) {
    %c0_i32 = arith.constant 0 : i32
    %c0_i32_0 = arith.constant 0 : i32
    %c0_i32_1 = arith.constant 0 : i32
    return %c0_i32, %c0_i32_0 : i32, i32
  }
  func.func @transform_2(%arg0: i32) -> (i32, i32) {
    %c0_i32 = arith.constant 0 : i32
    %c0_i32_0 = arith.constant 0 : i32
    %c0_i32_1 = arith.constant 0 : i32
    return %c0_i32, %c0_i32_0 : i32, i32
  }
  func.func @transform_3(%arg0: i32) -> (i32, i32) {
    %c0_i32 = arith.constant 0 : i32
    %c0_i32_0 = arith.constant 0 : i32
    %c0_i32_1 = arith.constant 0 : i32
    return %c0_i32, %c0_i32_0 : i32, i32
  }
  func.func @transform_4(%arg0: i32) -> (i32, i32) {
    %c0_i32 = arith.constant 0 : i32
    %c0_i32_0 = arith.constant 0 : i32
    %c0_i32_1 = arith.constant 0 : i32
    return %c0_i32, %c0_i32_0 : i32, i32
  }
  func.func @transform_5(%arg0: i32) -> (i32, i32) {
    %c0_i32 = arith.constant 0 : i32
    %c0_i32_0 = arith.constant 0 : i32
    %c0_i32_1 = arith.constant 0 : i32
    return %c0_i32, %c0_i32_0 : i32, i32
  }
  func.func @transform_6(%arg0: i32) -> (i32, i32) {
    %c0_i32 = arith.constant 0 : i32
    %c0_i32_0 = arith.constant 0 : i32
    %c0_i32_1 = arith.constant 0 : i32
    return %c0_i32, %c0_i32_0 : i32, i32
  }
  func.func @transform_7(%arg0: i32) -> (i32, i32) {
    %c0_i32 = arith.constant 0 : i32
    %c0_i32_0 = arith.constant 0 : i32
    return %arg0, %c0_i32 : i32, i32
  }
}

</mosaic_0001>

<bundles_post_ra>
// kernel: tpu_custom_call.1
= control target key start
LH: loop header
LB: loop body
LE: loop exit
PB: predicated region body
PF: predicated region fallthrough
CT: control target
= control target key end

     0   :  { %12 = vsyncpa [#allocation3], 0  ;;  %s1188_s0 = inlined_call_operand.hbm [shape: f32[16,128], index: 0, kind: input, shape index: {}]   ;;  %s1189_s1 = inlined_call_operand.hbm [shape: bf16[128,256], index: 1, kind: input, shape index: {}]   ;;  %s1190_s2 = inlined_call_operand.vmem [shape: f32[1,256], index: 2, kind: input, shape index: {}]   ;;  %s1191_s3 = inlined_call_operand.hbm [shape: bf16[256,256], index: 3, kind: input, shape index: {}]   ;;  %s1192_s4 = inlined_call_operand.vmem [shape: f32[1,256], index: 4, kind: input, shape index: {}]   ;;  %s1193_s5 = inlined_call_operand.hbm [shape: bf16[256,256], index: 5, kind: input, shape index: {}]   ;;  %s1194_s6 = inlined_call_operand.vmem [shape: f32[1,256], index: 6, kind: input, shape index: {}]   ;;  %s1195_s7 = inlined_call_operand.hbm [shape: f32[16,256], index: 7, kind: output, shape index: {}]  }
   0x1   :  { %13 = vsyncpa [#allocation6], 0 }
   0x2   :  { %14 = vsyncpa [#allocation9], 0 }
   0x3   :  { %15 = vsyncpa [#allocation4], 0  ;;  %s1092_s24 = smov [#allocation5]   ;;  %s1093_s26 = smov [#allocation2]  }
   0x4   :  { %s33_s25 = sshll.u32 %s1092_s24, 4  ;;  %s21_s27 = sshll.u32 %s1093_s26, 4  ;;  %s34_s25 = int_to_ptr.vmem [resolvable:$true] %s33_s25  ;;  %s22_s27 = int_to_ptr.vmem [resolvable:$true] %s21_s27 }
   0x5   :  { %s992_s28 = scalar_lea.vmem %s34_s25, 2048  ;;  %p997_p1 = scmp.lt.s32.totalorder %s34_s25, %s34_s25 }
   0x6   :  { %p993_p0 = scmp.ne.s32.totalorder %s34_s25, %s992_s28  ;;  %p998_p2 = scmp.lt.s32.totalorder %s992_s28, %s992_s28 }
   0x8   :  { %p999_p3 = por %p998_p2, %p997_p1 }
   0xa   :  { %p1000_p4 = pnand %p999_p3, %p993_p0 }
   0xc   :  { %1003 = shalt.err (!%p1000_p4)
}
   0xd   :  { %s1094_s29 = smov 128   ;;  %s1095_s30 = smov 8  }
   0xe   :  { %39 = dma.hbm_to_vmem [thread:$0]  %s1189_s1, 2048, %s34_s25, [#allocation6], %s1094_s29, %s1094_s29, %s1095_s30  }
   0xf   :  { %s1012_s10 = scalar_lea.vmem %s22_s27, 256  ;;  %p1017_p6 = scmp.lt.s32.totalorder %s22_s27, %s22_s27 }
  0x10   :  { %p1013_p5 = scmp.ne.s32.totalorder %s22_s27, %s1012_s10  ;;  %p1018_p7 = scmp.lt.s32.totalorder %s1012_s10, %s1012_s10 }
  0x12   :  { %p1019_p8 = por %p1018_p7, %p1017_p6 }
  0x14   :  { %p1020_p9 = pnand %p1019_p8, %p1013_p5 }
  0x16   :  { %1023 = shalt.err (!%p1020_p9)
}
  0x17   :  { %27 = dma.hbm_to_vmem [thread:$0]  %s1188_s0, 256, %s22_s27, [#allocation3], %s1094_s29, %s1094_s29, %s1095_s30  }
  0x18   :  { %s1096_s13 = smov [#allocation7]   ;;  %s1097_s15 = smov [#allocation8]  }
  0x19   :  { %s47_s14 = sshll.u32 %s1096_s13, 4  ;;  %s61_s16 = sshll.u32 %s1097_s15, 4  ;;  %s48_s14 = int_to_ptr.vmem [resolvable:$true] %s47_s14  ;;  %s62_s16 = int_to_ptr.vmem [resolvable:$true] %s61_s16 }
  0x1a   :  { %s1032_s1 = scalar_lea.vmem %s48_s14, 4096  ;;  %p1037_p11 = scmp.lt.s32.totalorder %s48_s14, %s48_s14 }
  0x1b   :  { %p1033_p10 = scmp.ne.s32.totalorder %s48_s14, %s1032_s1  ;;  %p1038_p12 = scmp.lt.s32.totalorder %s1032_s1, %s1032_s1 }
  0x1d   :  { %p1039_p13 = por %p1038_p12, %p1037_p11 }
  0x1f   :  { %p1040_p0 = pnand %p1039_p13, %p1033_p10 }
  0x21   :  { %1043 = shalt.err (!%p1040_p0)
}
  0x22   :  { %53 = dma.hbm_to_vmem [thread:$0]  %s1191_s3, 4096, %s48_s14, [#allocation6], %s1094_s29, %s1094_s29, %s1095_s30  }
  0x23   :  { %s1052_s0 = scalar_lea.vmem %s62_s16, 4096  ;;  %p1057_p2 = scmp.lt.s32.totalorder %s62_s16, %s62_s16 }
  0x24   :  { %p1053_p1 = scmp.ne.s32.totalorder %s62_s16, %s1052_s0  ;;  %p1058_p3 = scmp.lt.s32.totalorder %s1052_s0, %s1052_s0 }
  0x26   :  { %p1059_p4 = por %p1058_p3, %p1057_p2 }
  0x28   :  { %p1060_p5 = pnand %p1059_p4, %p1053_p1 }
  0x2a   :  { %1063 = shalt.err (!%p1060_p5)
}
  0x2b   :  { %67 = dma.hbm_to_vmem [thread:$0]  %s1193_s5, 4096, %s62_s16, [#allocation9], %s1094_s29, %s1094_s29, %s1095_s30  }
  0x2c   :  { %1084 = dma.done.wait [#allocation3], 256  }
  0x2d   :  { %1085 = vsyncadd [#allocation3], 4294967040 }
  0x2e   :  { %1086 = dma.done.wait [#allocation6], 6144  }
  0x2f   :  { %1087 = vsyncadd [#allocation6], 4294961152 }
  0x30   :  { %1088 = dma.done.wait [#allocation9], 4096  }
  0x31   :  { %1089 = vsyncadd [#allocation9], 4294963200  ;;  %v1098_v0 = vmov 0   ;;  %v864_v1 = vld [vmem:[#allocation5 + $0x74] ss:$8 sps:$4 sm:$0xff]   ;;  %s1099_s23 = smov [#allocation10]  }
  0x32   :  { %226 = vmatprep.mubr.bf16.mxu0 %v1098_v0  ;;  %v866_v2 = vld [vmem:[#allocation5 + $0x70] ss:$8 sps:$4 sm:$0xff]   ;;  %194 = vmatprep.subr.bf16.mxu0 %v864_v1  ;;  %v867_v3 = vld [vmem:[#allocation5 + $0x64] ss:$8 sps:$4 sm:$0xff]   ;;  %v869_v4 = vld [vmem:[#allocation5 + $0x60] ss:$8 sps:$4 sm:$0xff]  }
  0x33   :  { %195 = vmatpush1.bf16.msra.mxu0 %v866_v2  ;;  %v870_v5 = vld [vmem:[#allocation5 + $0x54] ss:$8 sps:$4 sm:$0xff]   ;;  %v872_v6 = vld [vmem:[#allocation5 + $0x50] ss:$8 sps:$4 sm:$0xff]   ;;  %v873_v7 = vld [vmem:[#allocation5 + $0x44] ss:$8 sps:$4 sm:$0xff]  }
  0x34   :  { %196 = vmatprep.subr.bf16.mxu0 %v867_v3  ;;  %v875_v8 = vld [vmem:[#allocation5 + $0x40] ss:$8 sps:$4 sm:$0xff]   ;;  %v876_v9 = vld [vmem:[#allocation5 + $0x34] ss:$8 sps:$4 sm:$0xff]   ;;  %v890_v11 = vld [vmem:[#allocation7 + $0x70] ss:$8 sps:$4 sm:$0xff]  }
  0x35   :  { %v888_v10 = vld [vmem:[#allocation7 + $0x74] ss:$8 sps:$4 sm:$0xff]   ;;  %v891_v12 = vld [vmem:[#allocation7 + $0x64] ss:$8 sps:$4 sm:$0xff]   ;;  %v878_v13 = vld [vmem:[#allocation5 + $0x30] ss:$8 sps:$4 sm:$0xff]  }
  0x36   :  { %451 = vmatprep.subr.bf16.mxu1 %v888_v10  ;;  %v893_v14 = vld [vmem:[#allocation7 + $0x60] ss:$8 sps:$4 sm:$0xff]   ;;  %v879_v15 = vld [vmem:[#allocation5 + $0x24] ss:$8 sps:$4 sm:$0xff]   ;;  %v894_v16 = vld [vmem:[#allocation7 + $0x54] ss:$8 sps:$4 sm:$0xff]  }
  0x37   :  { %197 = vmatpush1.bf16.msra.mxu0 %v869_v4  ;;  %452 = vmatpush1.bf16.msra.mxu1 %v890_v11  ;;  %v881_v17 = vld [vmem:[#allocation5 + $0x20] ss:$8 sps:$4 sm:$0xff]   ;;  %v896_v18 = vld [vmem:[#allocation7 + $0x50] ss:$8 sps:$4 sm:$0xff]   ;;  %v882_v19 = vld [vmem:[#allocation5 + $0x14] ss:$8 sps:$4 sm:$0xff]  }
  0x38   :  { %198 = vmatprep.subr.bf16.mxu0 %v870_v5  ;;  %453 = vmatprep.subr.bf16.mxu1 %v891_v12  ;;  %v897_v20 = vld [vmem:[#allocation7 + $0x44] ss:$8 sps:$4 sm:$0xff]   ;;  %v884_v21 = vld [vmem:[#allocation5 + $0x10] ss:$8 sps:$4 sm:$0xff]   ;;  %v899_v22 = vld [vmem:[#allocation7 + $0x40] ss:$8 sps:$4 sm:$0xff]   ;;  %v104_v12 = vlaneseq }
  0x39   :  { %v885_v23 = vld [vmem:[#allocation5 + $0x4] ss:$8 sps:$4 sm:$0xff]   ;;  %v900_v24 = vld [vmem:[#allocation7 + $0x34] ss:$8 sps:$4 sm:$0xff]   ;;  %v887_v25 = vld [vmem:[#allocation5] ss:$8 sps:$4 sm:$0xff]  }
  0x3a   :  { %v83_v26 = vld [vmem:[#allocation2] sm:$0xff]  ;;  %v84_v27 = vld [vmem:[#allocation2 + $0x8] sm:$0xff]  ;;  %v903_v29 = vld [vmem:[#allocation7 + $0x24] ss:$8 sps:$4 sm:$0xff]   ;;  %s760_s24 = sshll.u32 %s1099_s23, 4  ;;  %s761_s24 = int_to_ptr.vmem [resolvable:$true] %s760_s24 }
  0x3b   :  { %199 = vmatpush1.bf16.msra.mxu0 %v872_v6  ;;  %454 = vmatpush1.bf16.msra.mxu1 %v893_v14  ;;  %v902_v28 = vld [vmem:[#allocation7 + $0x30] ss:$8 sps:$4 sm:$0xff]   ;;  %v905_v30 = vld [vmem:[#allocation7 + $0x20] ss:$8 sps:$4 sm:$0xff]   ;;  %v85_v31 = vpack.c.bf16 %v84_v27, %v83_v26  ;;  %v906_v32 = vld [vmem:[#allocation7 + $0x14] ss:$8 sps:$4 sm:$0xff]   ;;  %p1069_p7 = scmp.lt.s32.totalorder %s761_s24, %s761_s24 }
  0x3c   :  { %200 = vmatprep.subr.bf16.mxu0 %v873_v7  ;;  %455 = vmatprep.subr.bf16.mxu1 %v894_v16  ;;  %v908_v33 = vld [vmem:[#allocation7 + $0x10] ss:$8 sps:$4 sm:$0xff]   ;;  %v909_v34 = vld [vmem:[#allocation7 + $0x4] ss:$8 sps:$4 sm:$0xff]   ;;  %v911_v35 = vld [vmem:[#allocation7] ss:$8 sps:$4 sm:$0xff]  }
  0x3d   :  { %v912_v36 = vld [vmem:[#allocation7 + $0xf4] ss:$8 sps:$4 sm:$0xff]   ;;  %v914_v37 = vld [vmem:[#allocation7 + $0xf0] ss:$8 sps:$4 sm:$0xff]   ;;  %v915_v38 = vld [vmem:[#allocation7 + $0xe4] ss:$8 sps:$4 sm:$0xff]  }
  0x3e   :  { %v917_v39 = vld [vmem:[#allocation7 + $0xe0] ss:$8 sps:$4 sm:$0xff]   ;;  %v918_v40 = vld [vmem:[#allocation7 + $0xd4] ss:$8 sps:$4 sm:$0xff]   ;;  %v920_v41 = vld [vmem:[#allocation7 + $0xd0] ss:$8 sps:$4 sm:$0xff]  }
  0x3f   :  { %201 = vmatpush1.bf16.msra.mxu0 %v875_v8  ;;  %456 = vmatpush1.bf16.msra.mxu1 %v896_v18  ;;  %v921_v42 = vld [vmem:[#allocation7 + $0xc4] ss:$8 sps:$4 sm:$0xff]   ;;  %v923_v43 = vld [vmem:[#allocation7 + $0xc0] ss:$8 sps:$4 sm:$0xff]   ;;  %v924_v44 = vld [vmem:[#allocation7 + $0xb4] ss:$8 sps:$4 sm:$0xff]  }
  0x40   :  { %202 = vmatprep.subr.bf16.mxu0 %v876_v9  ;;  %457 = vmatprep.subr.bf16.mxu1 %v897_v20  ;;  %v926_v45 = vld [vmem:[#allocation7 + $0xb0] ss:$8 sps:$4 sm:$0xff]   ;;  %v927_v46 = vld [vmem:[#allocation7 + $0xa4] ss:$8 sps:$4 sm:$0xff]   ;;  %v929_v47 = vld [vmem:[#allocation7 + $0xa0] ss:$8 sps:$4 sm:$0xff]  }
  0x41   :  { %v930_v48 = vld [vmem:[#allocation7 + $0x94] ss:$8 sps:$4 sm:$0xff]   ;;  %v932_v49 = vld [vmem:[#allocation7 + $0x90] ss:$8 sps:$4 sm:$0xff]   ;;  %v933_v50 = vld [vmem:[#allocation7 + $0x84] ss:$8 sps:$4 sm:$0xff]  }
  0x42   :  { %v935_v51 = vld [vmem:[#allocation7 + $0x80] ss:$8 sps:$4 sm:$0xff]   ;;  %v936_v52 = vld [vmem:[#allocation8 + $0x70] ss:$8 sps:$4 sm:$0xff]   ;;  %v938_v53 = vld [vmem:[#allocation8 + $0x74] ss:$8 sps:$4 sm:$0xff]  }
  0x43   :  { %203 = vmatpush1.bf16.msra.mxu0 %v878_v13  ;;  %458 = vmatpush1.bf16.msra.mxu1 %v899_v22  ;;  %v941_v54 = vld [vmem:[#allocation8 + $0x64] ss:$8 sps:$4 sm:$0xff]   ;;  %v939_v55 = vld [vmem:[#allocation8 + $0x60] ss:$8 sps:$4 sm:$0xff]   ;;  %v944_v56 = vld [vmem:[#allocation8 + $0x54] ss:$8 sps:$4 sm:$0xff]  }
  0x44   :  { %204 = vmatprep.subr.bf16.mxu0 %v879_v15  ;;  %459 = vmatprep.subr.bf16.mxu1 %v900_v24  ;;  %v942_v57 = vld [vmem:[#allocation8 + $0x50] ss:$8 sps:$4 sm:$0xff]   ;;  %v947_v58 = vld [vmem:[#allocation8 + $0x44] ss:$8 sps:$4 sm:$0xff]   ;;  %v945_v59 = vld [vmem:[#allocation8 + $0x40] ss:$8 sps:$4 sm:$0xff]  }
  0x45   :  { %v950_v60 = vld [vmem:[#allocation8 + $0x34] ss:$8 sps:$4 sm:$0xff]   ;;  %v948_v61 = vld [vmem:[#allocation8 + $0x30] ss:$8 sps:$4 sm:$0xff]   ;;  %v953_v62 = vld [vmem:[#allocation8 + $0x24] ss:$8 sps:$4 sm:$0xff]  }
  0x46   :  { %v951_v63 = vld [vmem:[#allocation8 + $0x20] ss:$8 sps:$4 sm:$0xff]   ;;  %v956_v0 = vld [vmem:[#allocation8 + $0x14] ss:$8 sps:$4 sm:$0xff]   ;;  %v954_v1 = vld [vmem:[#allocation8 + $0x10] ss:$8 sps:$4 sm:$0xff]  }
  0x47   :  { %205 = vmatpush1.bf16.msra.mxu0 %v881_v17  ;;  %460 = vmatpush1.bf16.msra.mxu1 %v902_v28  ;;  %v959_v2 = vld [vmem:[#allocation8 + $0x4] ss:$8 sps:$4 sm:$0xff]   ;;  %v957_v3 = vld [vmem:[#allocation8] ss:$8 sps:$4 sm:$0xff]   ;;  %v962_v4 = vld [vmem:[#allocation8 + $0xf4] ss:$8 sps:$4 sm:$0xff]  }
  0x48   :  { %206 = vmatprep.subr.bf16.mxu0 %v882_v19  ;;  %461 = vmatprep.subr.bf16.mxu1 %v903_v29  ;;  %v960_v5 = vld [vmem:[#allocation8 + $0xf0] ss:$8 sps:$4 sm:$0xff]   ;;  %v965_v6 = vld [vmem:[#allocation8 + $0xe4] ss:$8 sps:$4 sm:$0xff]   ;;  %v963_v7 = vld [vmem:[#allocation8 + $0xe0] ss:$8 sps:$4 sm:$0xff]  }
  0x49   :  { %v968_v8 = vld [vmem:[#allocation8 + $0xd4] ss:$8 sps:$4 sm:$0xff]   ;;  %v966_v9 = vld [vmem:[#allocation8 + $0xd0] ss:$8 sps:$4 sm:$0xff]   ;;  %v971_v10 = vld [vmem:[#allocation8 + $0xc4] ss:$8 sps:$4 sm:$0xff]  }
  0x4a   :  { %v969_v11 = vld [vmem:[#allocation8 + $0xc0] ss:$8 sps:$4 sm:$0xff]   ;;  %v105_v13 = vshrl.u32 %v104_v12, 7  ;;  %v102_v16 = vld [vmem:[%s1190_s2] sm:$0x3] }
  0x4b   :  { %207 = vmatpush1.bf16.msra.mxu0 %v884_v21  ;;  %462 = vmatpush1.bf16.msra.mxu1 %v905_v30 }
  0x4c   :  { %208 = vmatprep.subr.bf16.mxu0 %v885_v23  ;;  %463 = vmatprep.subr.bf16.mxu1 %v906_v32  ;;  %v1166_v14 = vsub.s32 1, %v105_v13  ;;  %v1168_v15 = vsub.s32 0, %v105_v13 }
  0x4e   :  { %v111_v17 = vrot.slane %v102_v16, %v1166_v14  ;;  %v107_v18 = vrot.slane %v102_v16, %v1168_v15 }
  0x4f   :  { %209 = vmatpush1.bf16.msra.mxu0 %v887_v25  ;;  %464 = vmatpush1.bf16.msra.mxu1 %v908_v33 }
  0x50   :  { %465 = vmatprep.subr.bf16.mxu1 %v909_v34  ;;  %708 = vmatprep.subr.bf16.mxu0 %v938_v53 }
  0x52   :  { %227 = vmatmul.mubr.bf16.vlgmr.msra.gmra.mxu0 %v85_v31 }
  0x53   :  { %466 = vmatpush1.bf16.msra.mxu1 %v911_v35  ;;  %709 = vmatpush1.bf16.msra.mxu0 %v936_v52 }
  0x54   :  { %467 = vmatprep.subr.bf16.mxu1 %v912_v36  ;;  %710 = vmatprep.subr.bf16.mxu0 %v941_v54 }
  0x57   :  { %468 = vmatpush2.bf16.msra.mxu1 %v914_v37  ;;  %711 = vmatpush1.bf16.msra.mxu0 %v939_v55  ;;  %v974_v37 = vld [vmem:[#allocation8 + $0xb4] ss:$8 sps:$4 sm:$0xff]  }
  0x58   :  { %469 = vmatprep.subr.bf16.mxu1 %v915_v38  ;;  %712 = vmatprep.subr.bf16.mxu0 %v944_v56  ;;  %v972_v38 = vld [vmem:[#allocation8 + $0xb0] ss:$8 sps:$4 sm:$0xff]  }
  0x5b   :  { %470 = vmatpush2.bf16.msra.mxu1 %v917_v39  ;;  %713 = vmatpush1.bf16.msra.mxu0 %v942_v57  ;;  %v977_v39 = vld [vmem:[#allocation8 + $0xa4] ss:$8 sps:$4 sm:$0xff]  }
  0x5c   :  { %471 = vmatprep.subr.bf16.mxu1 %v918_v40  ;;  %714 = vmatprep.subr.bf16.mxu0 %v947_v58  ;;  %v975_v40 = vld [vmem:[#allocation8 + $0xa0] ss:$8 sps:$4 sm:$0xff]  }
  0x5f   :  { %472 = vmatpush2.bf16.msra.mxu1 %v920_v41  ;;  %715 = vmatpush1.bf16.msra.mxu0 %v945_v59  ;;  %v980_v41 = vld [vmem:[#allocation8 + $0x94] ss:$8 sps:$4 sm:$0xff]  }
  0x60   :  { %473 = vmatprep.subr.bf16.mxu1 %v921_v42  ;;  %716 = vmatprep.subr.bf16.mxu0 %v950_v60  ;;  %v978_v42 = vld [vmem:[#allocation8 + $0x90] ss:$8 sps:$4 sm:$0xff]  }
  0x63   :  { %474 = vmatpush2.bf16.msra.mxu1 %v923_v43  ;;  %717 = vmatpush1.bf16.msra.mxu0 %v948_v61  ;;  %v983_v43 = vld [vmem:[#allocation8 + $0x84] ss:$8 sps:$4 sm:$0xff]  }
  0x64   :  { %475 = vmatprep.subr.bf16.mxu1 %v924_v44  ;;  %718 = vmatprep.subr.bf16.mxu0 %v953_v62  ;;  %v981_v44 = vld [vmem:[#allocation8 + $0x80] ss:$8 sps:$4 sm:$0xff]  }
  0x67   :  { %476 = vmatpush2.bf16.msra.mxu1 %v926_v45  ;;  %719 = vmatpush1.bf16.msra.mxu0 %v951_v63  ;;  %v279_v45 = vld [vmem:[%s1192_s4] sm:$0x3] }
  0x68   :  { %477 = vmatprep.subr.bf16.mxu1 %v927_v46  ;;  %720 = vmatprep.subr.bf16.mxu0 %v956_v0  ;;  %v288_v46 = vrot.slane %v279_v45, %v1166_v14 }
  0x6b   :  { %478 = vmatpush2.bf16.msra.mxu1 %v929_v47  ;;  %721 = vmatpush1.bf16.msra.mxu0 %v954_v1  ;;  %v284_v47 = vrot.slane %v279_v45, %v1168_v15 }
  0x6c   :  { %479 = vmatprep.subr.bf16.mxu1 %v930_v48  ;;  %722 = vmatprep.subr.bf16.mxu0 %v959_v2  ;;  %v536_v2 = vld [vmem:[%s1194_s6] sm:$0x3]  ;;  %s1064_s6 = scalar_lea.vmem %s761_s24, 512 }
  0x6d   :  { %p1065_p6 = scmp.ne.s32.totalorder %s761_s24, %s1064_s6  ;;  %p1070_p8 = scmp.lt.s32.totalorder %s1064_s6, %s1064_s6 }
  0x6f   :  { %480 = vmatpush2.bf16.msra.mxu1 %v932_v49  ;;  %723 = vmatpush1.bf16.msra.mxu0 %v957_v3  ;;  %v541_v3 = vrot.slane %v536_v2, %v1168_v15  ;;  %p1071_p9 = por %p1070_p8, %p1069_p7 }
  0x70   :  { %481 = vmatprep.subr.bf16.mxu1 %v933_v50  ;;  %724 = vmatprep.subr.bf16.mxu0 %v962_v4  ;;  %v545_v4 = vrot.slane %v536_v2, %v1166_v14 }
  0x71   :  { %p1072_p10 = pnand %p1071_p9, %p1065_p6 }
  0x73   :  { %482 = vmatpush2.bf16.msra.mxu1 %v935_v51  ;;  %725 = vmatpush2.bf16.msra.mxu0 %v960_v5 }
  0x74   :  { %726 = vmatprep.subr.bf16.mxu0 %v965_v6 }
  0x77   :  { %727 = vmatpush2.bf16.msra.mxu0 %v963_v7 }
  0x78   :  { %728 = vmatprep.subr.bf16.mxu0 %v968_v8 }
  0x7b   :  { %729 = vmatpush2.bf16.msra.mxu0 %v966_v9 }
  0x7c   :  { %730 = vmatprep.subr.bf16.mxu0 %v971_v10 }
  0x7f   :  { %731 = vmatpush2.bf16.msra.mxu0 %v969_v11 }
  0x80   :  { %732 = vmatprep.subr.bf16.mxu0 %v974_v37 }
  0x83   :  { %733 = vmatpush2.bf16.msra.mxu0 %v972_v38 }
  0x84   :  { %734 = vmatprep.subr.bf16.mxu0 %v977_v39 }
  0x87   :  { %735 = vmatpush2.bf16.msra.mxu0 %v975_v40 }
  0x88   :  { %736 = vmatprep.subr.bf16.mxu0 %v980_v41 }
  0x8b   :  { %737 = vmatpush2.bf16.msra.mxu0 %v978_v42 }
  0x8c   :  { %738 = vmatprep.subr.bf16.mxu0 %v983_v43 }
  0x8f   :  { %739 = vmatpush2.bf16.msra.mxu0 %v981_v44 }
 0x112   :  { %v228_v19 = vpop.f32.mrf.mxu0 }
 0x113   :  { %v229_v22 = vadd.f32 %v228_v19, %v107_v18 }
 0x114   :  { %v230_v20 = vpop.f32.mrf.mxu0 }
 0x115   :  { %v231_v21 = vadd.f32 %v230_v20, %v111_v17  ;;  %v237_v29 = vmul.f32 0.2, %v229_v22 }
 0x116   :  { %v232_v23 = vpop.f32.mrf.mxu0 }
 0x117   :  { %v233_v24 = vadd.f32 %v232_v23, %v107_v18  ;;  %v238_v26 = vmul.f32 0.2, %v231_v21  ;;  %v241_v34 = vmax.f32 %v229_v22, %v237_v29 }
 0x118   :  { %v234_v25 = vpop.f32.mrf.mxu0 }
 0x119   :  { %v239_v27 = vmul.f32 0.2, %v233_v24  ;;  %v235_v28 = vadd.f32 %v234_v25, %v111_v17  ;;  %v242_v32 = vmax.f32 %v231_v21, %v238_v26 }
 0x11b   :  { %v240_v30 = vmul.f32 0.2, %v235_v28  ;;  %v243_v31 = vmax.f32 %v233_v24, %v239_v27 }
 0x11d   :  { %v244_v33 = vmax.f32 %v235_v28, %v240_v30  ;;  %v245_v36 = vpack.c.bf16 %v243_v31, %v241_v34 }
 0x11f   :  { %v246_v35 = vpack.c.bf16 %v244_v33, %v242_v32 }
 0x121   :  { %483 = vmatprep.mubr.bf16.mxu1 %v246_v35 }
 0x122   :  { %484 = vmatmul.mubr.bf16.vlgmr.msra.gmra.mxu1 %v245_v36 }
 0x1e2   :  { %v485_v48 = vpop.f32.mrf.mxu1 }
 0x1e3   :  { %v486_v51 = vadd.f32 %v485_v48, %v284_v47 }
 0x1e4   :  { %v487_v49 = vpop.f32.mrf.mxu1 }
 0x1e5   :  { %v488_v50 = vadd.f32 %v487_v49, %v288_v46  ;;  %v494_v58 = vmul.f32 0.2, %v486_v51 }
 0x1e6   :  { %v489_v52 = vpop.f32.mrf.mxu1 }
 0x1e7   :  { %v490_v53 = vadd.f32 %v489_v52, %v284_v47  ;;  %v495_v55 = vmul.f32 0.2, %v488_v50  ;;  %v498_v63 = vmax.f32 %v486_v51, %v494_v58 }
 0x1e8   :  { %v491_v54 = vpop.f32.mrf.mxu1 }
 0x1e9   :  { %v496_v56 = vmul.f32 0.2, %v490_v53  ;;  %v492_v57 = vadd.f32 %v491_v54, %v288_v46  ;;  %v499_v61 = vmax.f32 %v488_v50, %v495_v55 }
 0x1eb   :  { %v497_v59 = vmul.f32 0.2, %v492_v57  ;;  %v500_v60 = vmax.f32 %v490_v53, %v496_v56 }
 0x1ed   :  { %v501_v62 = vmax.f32 %v492_v57, %v497_v59  ;;  %v502_v1 = vpack.c.bf16 %v500_v60, %v498_v63 }
 0x1ef   :  { %v503_v0 = vpack.c.bf16 %v501_v62, %v499_v61 }
 0x1f1   :  { %740 = vmatprep.mubr.bf16.mxu0 %v503_v0 }
 0x1f2   :  { %741 = vmatmul.mubr.bf16.vlgmr.msra.gmra.mxu0 %v502_v1 }
 0x2b2   :  { %v742_v5 = vpop.f32.mrf.mxu0 }
 0x2b3   :  { %v743_v6 = vadd.f32 %v742_v5, %v541_v3 }
 0x2b4   :  { %v744_v7 = vpop.f32.mrf.mxu0 }
 0x2b5   :  { %751 = vst [vmem:[#allocation10] sm:$0xff] %v743_v6  ;;  %v745_v8 = vadd.f32 %v744_v7, %v545_v4 }
 0x2b6   :  { %v746_v9 = vpop.f32.mrf.mxu0 }
 0x2b7   :  { %752 = vst [vmem:[#allocation10 + $0x8] sm:$0xff] %v745_v8  ;;  %v747_v10 = vadd.f32 %v746_v9, %v541_v3 }
 0x2b8   :  { %v748_v11 = vpop.f32.mrf.mxu0 }
 0x2b9   :  { %753 = vst [vmem:[#allocation10 + $0x10] sm:$0xff] %v747_v10  ;;  %v749_v12 = vadd.f32 %v748_v11, %v545_v4 }
 0x2bb   :  { %754 = vst [vmem:[#allocation10 + $0x18] sm:$0xff] %v749_v12 }
 0x2bc   :  { %1075 = shalt.err (!%p1072_p10)
}
 0x2bd   :  { %s1100_s25 = smov 256   ;;  %s1101_s26 = smov 16  }
 0x2be   :  { %766 = dma.vmem_to_hbm [thread:$0]  %s761_s24, 512, %s1195_s7, [#allocation4], %s1100_s25, %s1100_s25, %s1101_s26  }
 0x2bf   :  { %1090 = dma.done.wait [#allocation4], 512  }
 0x2c0   :  { %1091 = vsyncadd [#allocation4], 4294966784 }
 0x2c1   :  { %770 = vsyncpa [#allocation3], 1 }
 0x2c2   :  { %771 = vsyncpa [#allocation6], 1 }
 0x2c3   :  { %772 = vsyncpa [#allocation9], 1 }
 0x2c4   :  { %773 = vsyncpa [#allocation4], 1 }

</bundles_post_ra>
